<compile_context>
chip_gen: v7x
topology: tpu7x:2x2x1
jax: 0.10.0
libtpu: 0.0.40
codegen_flags: <defaults>
</compile_context>

<pallas_src>
import math

import jax
import jax.numpy as jnp
from jax.experimental import pallas as pl
from jax.experimental.pallas import tpu as pltpu


# ----------------------------------------------------------------------------
# One-time parameter prep (fused weight slab, shared by cell and seq kernels).
# Column order of the fused operand / weight: [h_bottom | h_top | h].
# ----------------------------------------------------------------------------
def prep_hm_lstm_params(params, bottom_size, hidden_size, top_size,
                        matmul_dtype=jnp.float32):
    W01, U11, U21, bias = params
    H = hidden_size
    W_cat = jnp.concatenate([W01, U21, U11], axis=1)          # (4H+1, Din)
    wg_T = W_cat[:4 * H, :].T.astype(matmul_dtype)            # (Din, 4H)
    wz = W_cat[4 * H:4 * H + 1, :].astype(jnp.float32)        # (1, Din)
    bias_g = bias[:4 * H].reshape(1, 4 * H).astype(jnp.float32)
    bias_z = bias[4 * H:4 * H + 1].reshape(1, 1).astype(jnp.float32)
    return wg_T, wz, bias_g, bias_z


def _epilogue(f_s, z_logit, c_prev, h_prev, z, zb, a, H):
    """Shared gate/blend epilogue (all f32)."""
    sig = jax.nn.sigmoid(f_s[:, 0:3 * H])          # one EUP pass for f, i, o
    f = sig[:, 0:H]
    i = sig[:, H:2 * H]
    o = sig[:, 2 * H:3 * H]
    g = jnp.tanh(f_s[:, 3 * H:4 * H])

    # Materialize the (B, H) broadcasts once; reuse everywhere.
    z_b = jnp.broadcast_to(z, c_prev.shape)
    zb_b = jnp.broadcast_to(zb, c_prev.shape)
    omz_b = 1.0 - z_b
    omzb_b = 1.0 - zb_b

    ig = i * g
    c_new = z_b * ig + omz_b * (omzb_b * c_prev + zb_b * (f * c_prev + ig))
    ot = o * jnp.tanh(c_new)
    h_new = z_b * ot + omz_b * (omzb_b * h_prev + zb_b * ot)

    if a > 0:
        # bound(hard_sigm(a, x)) == (x > 0) exactly for a > 0
        # (tie at x == 0 gives 0 in both formulations -- keep strict '>').
        z_new = (z_logit > 0.0).astype(jnp.float32)
    else:
        z_hat = jnp.clip((a * z_logit + 1.0) * 0.5, 0.0, 1.0)
        z_new = (z_hat > 0.5).astype(jnp.float32)
    return h_new, c_new, z_new


# ----------------------------------------------------------------------------
# Single-step cell kernel (batch-major, matches HM_LSTMCell.forward,
# last_layer=False).
# ----------------------------------------------------------------------------
def _make_cell_kernel(bottom_size, hidden_size, top_size, a,
                      matmul_dtype=jnp.float32):
    H = hidden_size
    BOT = bottom_size
    Dx = bottom_size + top_size
    Din = Dx + hidden_size

    def kernel(wg_ref, wz_ref, bg_ref, bz_ref,
               hb_ref, ht_ref, h_ref, c_ref, z_ref, zb_ref,
               out_ref, op_buf):
        z = z_ref[...]                       # (B, 1)
        zb = zb_ref[...]                     # (B, 1)
        h_prev = h_ref[...]                  # (B, H)
        c_prev = c_ref[...]                  # (B, H)

        # Assemble the fused operand [h_bottom | z*h_top | zb*h] in VMEM
        # (direct slice-wise scaling; no iota/where, no wrapper concat).
        op_buf[:, 0:BOT] = hb_ref[...]
        op_buf[:, BOT:Dx] = ht_ref[...] * z
        op_buf[:, Dx:Din] = h_prev * zb
        operand = op_buf[...]                # (B, Din)

        # One MXU dot for the 128-lane gate slab; z-row as a lane reduction.
        f_s = (jnp.dot(operand.astype(matmul_dtype), wg_ref[...],
                       preferred_element_type=jnp.float32)
               + bg_ref[...])                                  # (B, 4H)
        z_logit = (jnp.sum(operand * wz_ref[...], axis=1, keepdims=True)
                   + bz_ref[...])                              # (B, 1)

        h_new, c_new, z_new = _epilogue(f_s, z_logit, c_prev, h_prev,
                                        z, zb, a, H)

        # Merged output slab [h | c | z] -> one writeback DMA.
        out_ref[:, 0:H] = h_new
        out_ref[:, H:2 * H] = c_new
        out_ref[:, 2 * H:2 * H + 1] = z_new

    return kernel


def hm_lstm_cell_pallas_bm(prepped, c, h_bottom, h, h_top, z, z_bottom, *,
                           a, bottom_size, hidden_size, top_size,
                           matmul_dtype=jnp.float32):
    """Batch-major single-step cell: all activations are (B, features)."""
    wg_T, wz, bias_g, bias_z = prepped
    H = hidden_size
    B = c.shape[0]
    Din = bottom_size + top_size + hidden_size

    vmem = pl.BlockSpec(memory_space=pltpu.MemorySpace.VMEM)
    out = pl.pallas_call(
        _make_cell_kernel(bottom_size, hidden_size, top_size, a, matmul_dtype),
        out_shape=jax.ShapeDtypeStruct((B, 2 * H + 1), jnp.float32),
        in_specs=[vmem] * 10,
        out_specs=vmem,
        scratch_shapes=[pltpu.VMEM((B, Din), jnp.float32)],
    )(wg_T, wz, bias_g, bias_z, h_bottom, h_top, h, c, z, z_bottom)

    return out[:, 0:H], out[:, H:2 * H], out[:, 2 * H:2 * H + 1]


def hm_lstm_cell_pallas(prepped, c, h_bottom, h, h_top, z, z_bottom, *,
                        a, bottom_size, hidden_size, top_size,
                        matmul_dtype=jnp.float32):
    """Module-layout ((features, batch)) compatibility wrapper.

    Prefer the batch-major API above in real models so these transposes
    disappear.
    """
    h_new, c_new, z_new = hm_lstm_cell_pallas_bm(
        prepped, c.T, h_bottom.T, h.T, h_top.T, z.T, z_bottom.T,
        a=a, bottom_size=bottom_size, hidden_size=hidden_size,
        top_size=top_size, matmul_dtype=matmul_dtype)
    return h_new.T, c_new.T, z_new.T


# ----------------------------------------------------------------------------
# Sequence kernel: TILE_T steps per grid point, time loop unrolled inside the
# body; c/h/z recurrence carried in VMEM scratch across grid steps.
# ----------------------------------------------------------------------------
def _make_seq_kernel(bottom_size, hidden_size, top_size, a, tile_t,
                     matmul_dtype=jnp.float32):
    H = hidden_size
    BOT = bottom_size
    Dx = bottom_size + top_size
    Din = Dx + hidden_size

    def kernel(wg_ref, wz_ref, bg_ref, bz_ref, x_ref, c0_ref, h0_ref, z0_ref,
               out_ref, c_st, h_st, z_st, op_buf):
        @pl.when(pl.program_id(0) == 0)
        def _():
            c_st[...] = c0_ref[...]
            h_st[...] = h0_ref[...]
            z_st[...] = z0_ref[...]

        # Hoist weight/bias loads out of the time loop.
        wg = wg_ref[...]                     # (Din, 4H)
        wz = wz_ref[...]                     # (1, Din)
        bg = bg_ref[...]                     # (1, 4H)
        bz = bz_ref[...]                     # (1, 1)

        def step(t, carry):
            c_prev, h_prev, z_prev = carry
            row = x_ref[t]                   # (B, Dx+1): [h_bottom | h_top | zb]
            zb = row[:, Dx:Dx + 1]

            # Fused operand [h_bottom | z*h_top | zb*h] (slice-wise scaling).
            op_buf[:, 0:BOT] = row[:, 0:BOT]
            op_buf[:, BOT:Dx] = row[:, BOT:Dx] * z_prev
            op_buf[:, Dx:Din] = h_prev * zb
            operand = op_buf[...]

            f_s = (jnp.dot(operand.astype(matmul_dtype), wg,
                           preferred_element_type=jnp.float32) + bg)
            z_logit = jnp.sum(operand * wz, axis=1, keepdims=True) + bz

            h_new, c_new, z_new = _epilogue(f_s, z_logit, c_prev, h_prev,
                                            z_prev, zb, a, H)

            # Merged streamed output slab for this step.
            out_ref[t, :, 0:H] = h_new
            out_ref[t, :, H:2 * H] = c_new
            out_ref[t, :, 2 * H:2 * H + 1] = z_new
            return (c_new, h_new, z_new)

        c_fin, h_fin, z_fin = jax.lax.fori_loop(
            0, tile_t, step, (c_st[...], h_st[...], z_st[...]), unroll=True)

        # Carry the recurrence across grid steps.
        c_st[...] = c_fin
        h_st[...] = h_fin
        z_st[...] = z_fin

    return kernel


def hm_lstm_seq_pallas(params, c0, h0, z0, hb_seq, ht_seq, zb_seq, *,
                       a, bottom_size, hidden_size, top_size,
                       tile_t=8, matmul_dtype=jnp.float32):
    """Run HM_LSTMCell over T timesteps with one pallas_call.

    hb_seq: (T, bottom, B), ht_seq: (T, top, B), zb_seq: (T, 1, B);
    c0/h0: (H, B), z0: (1, B).  Returns (h_seq, c_seq, z_seq) in module layout
    (T, H, B), (T, H, B), (T, 1, B).

    NOTE: batch B should be made as large as possible (stack independent
    sequences) to fill MXU rows; the matmul cost is flat up to a full pass.
    """
    H = hidden_size
    BOT = bottom_size
    Dx = bottom_size + top_size
    Din = Dx + hidden_size
    T = hb_seq.shape[0]
    B = c0.shape[1]
    OUT_W = 2 * H + 1

    wg_T, wz, bias_g, bias_z = prep_hm_lstm_params(
        params, bottom_size, hidden_size, top_size, matmul_dtype)

    # Batch-major streamed slab with zb folded in as the trailing column.
    x_slab = jnp.concatenate(
        [jnp.transpose(hb_seq, (0, 2, 1)),
         jnp.transpose(ht_seq, (0, 2, 1)),
         jnp.transpose(zb_seq, (0, 2, 1))], axis=-1)           # (T, B, Dx+1)

    # Pad T to a multiple of tile_t (padded steps are sliced off afterwards).
    n_chunks = pl.cdiv(T, tile_t)
    Tp = n_chunks * tile_t
    if Tp != T:
        x_slab = jnp.pad(x_slab, ((0, Tp - T), (0, 0), (0, 0)))

    c0T, h0T, z0T = c0.T, h0.T, z0.T

    grid_spec = pltpu.PrefetchScalarGridSpec(
        num_scalar_prefetch=0,
        grid=(n_chunks,),
        in_specs=[
            pl.BlockSpec((Din, 4 * H), lambda t: (0, 0)),      # wg_T (resident)
            pl.BlockSpec((1, Din), lambda t: (0, 0)),          # wz
            pl.BlockSpec((1, 4 * H), lambda t: (0, 0)),        # bias_g
            pl.BlockSpec((1, 1), lambda t: (0, 0)),            # bias_z
            pl.BlockSpec((tile_t, B, Dx + 1), lambda t: (t, 0, 0)),  # x slab
            pl.BlockSpec((B, H), lambda t: (0, 0)),            # c0
            pl.BlockSpec((B, H), lambda t: (0, 0)),            # h0
            pl.BlockSpec((B, 1), lambda t: (0, 0)),            # z0
        ],
        out_specs=pl.BlockSpec((tile_t, B, OUT_W), lambda t: (t, 0, 0)),
        scratch_shapes=[
            pltpu.VMEM((B, H), jnp.float32),                   # c carry
            pltpu.VMEM((B, H), jnp.float32),                   # h carry
            pltpu.VMEM((B, 1), jnp.float32),                   # z carry
            pltpu.VMEM((B, Din), jnp.float32),                 # fused operand
        ],
    )

    out = pl.pallas_call(
        _make_seq_kernel(bottom_size, hidden_size, top_size, a, tile_t,
                         matmul_dtype),
        out_shape=jax.ShapeDtypeStruct((Tp, B, OUT_W), jnp.float32),
        grid_spec=grid_spec,
        compiler_params=pltpu.CompilerParams(
            dimension_semantics=("arbitrary",)),   # recurrence -> sequential T
    )(wg_T, wz, bias_g, bias_z, x_slab, c0T, h0T, z0T)

    out = out[:T]
    h_seq = jnp.transpose(out[:, :, 0:H], (0, 2, 1))
    c_seq = jnp.transpose(out[:, :, H:2 * H], (0, 2, 1))
    z_seq = jnp.transpose(out[:, :, 2 * H:2 * H + 1], (0, 2, 1))
    return h_seq, c_seq, z_seq


# ----------------------------------------------------------------------------
# Pure-JAX reference mirroring the PyTorch forward.
# ----------------------------------------------------------------------------
def hm_lstm_cell_ref(params, c, h_bottom, h, h_top, z, z_bottom, *,
                     a, hidden_size):
    W01, U11, U21, bias = params
    H = hidden_size
    s_recur = W01 @ h_bottom
    s_topdown = z * (U21 @ h_top)
    s_bottomup = z_bottom * (U11 @ h)
    f_s = s_recur + s_topdown + s_bottomup + bias[:, None]
    f = jax.nn.sigmoid(f_s[0:H, :])
    i = jax.nn.sigmoid(f_s[H:2 * H, :])
    o = jax.nn.sigmoid(f_s[2 * H:3 * H, :])
    g = jnp.tanh(f_s[3 * H:4 * H, :])
    z_hat = jnp.clip((a * f_s[4 * H:4 * H + 1, :] + 1.0) / 2.0, 0.0, 1.0)
    c_new = (z * (i * g)
             + (1 - z) * (1 - z_bottom) * c
             + (1 - z) * z_bottom * (f * c + i * g))
    h_new = (z * o * jnp.tanh(c_new)
             + (1 - z) * (1 - z_bottom) * h
             + (1 - z) * z_bottom * o * jnp.tanh(c_new))
    z_new = (z_hat > 0.5).astype(jnp.float32)
    return h_new, c_new, z_new


if __name__ == "__main__":
    bottom_size, hidden_size, top_size = 16, 32, 24
    batch = 8
    T = 16
    a = 1.0
    H = hidden_size
    stdv = 1.0 / math.sqrt(hidden_size)

    key = jax.random.PRNGKey(0)
    ks = jax.random.split(key, 16)

    # Parameters (last_layer=False), uniform(-stdv, stdv) init.
    W01 = jax.random.uniform(ks[0], (4 * H + 1, bottom_size), jnp.float32, -stdv, stdv)
    U11 = jax.random.uniform(ks[1], (4 * H + 1, hidden_size), jnp.float32, -stdv, stdv)
    U21 = jax.random.uniform(ks[2], (4 * H + 1, top_size), jnp.float32, -stdv, stdv)
    bias = jax.random.uniform(ks[3], (4 * H + 1,), jnp.float32, -stdv, stdv)
    params = (W01, U11, U21, bias)

    # States/inputs in (features, batch) layout, matching the PyTorch module.
    c = jax.random.normal(ks[4], (H, batch), jnp.float32)
    h_bottom = jax.random.normal(ks[5], (bottom_size, batch), jnp.float32)
    h = jax.random.normal(ks[6], (H, batch), jnp.float32)
    h_top = jax.random.normal(ks[7], (top_size, batch), jnp.float32)
    z = (jax.random.uniform(ks[8], (1, batch)) > 0.5).astype(jnp.float32)
    z_bottom = (jax.random.uniform(ks[9], (1, batch)) > 0.5).astype(jnp.float32)

    # ---- single-step cell (exact module forward) ----
    # NOTE: on v6e/v7x pass matmul_dtype=jnp.bfloat16 for native-MXU operands
    # (loosen tolerances to ~1e-2); default f32 keeps the strict check exact.
    prepped = prep_hm_lstm_params(params, bottom_size, hidden_size, top_size)
    h_new, c_new, z_new = jax.block_until_ready(
        hm_lstm_cell_pallas(prepped, c, h_bottom, h, h_top, z, z_bottom,
                            a=a, bottom_size=bottom_size,
                            hidden_size=H, top_size=top_size))

    h_ref, c_ref, z_ref = hm_lstm_cell_ref(params, c, h_bottom, h, h_top,
                                           z, z_bottom, a=a, hidden_size=H)
    assert jnp.allclose(h_new, h_ref, atol=2e-5, rtol=2e-5)
    assert jnp.allclose(c_new, c_ref, atol=2e-5, rtol=2e-5)
    assert jnp.allclose(z_new, z_ref)

    # ---- fused, chunked time-loop version (one pallas_call for T steps) ----
    hb_seq = jax.random.normal(ks[10], (T, bottom_size, batch), jnp.float32)
    ht_seq = jax.random.normal(ks[11], (T, top_size, batch), jnp.float32)
    zb_seq = (jax.random.uniform(ks[12], (T, 1, batch)) > 0.5).astype(jnp.float32)

    h_seq, c_seq, z_seq = jax.block_until_ready(
        hm_lstm_seq_pallas(params, c, h, z, hb_seq, ht_seq, zb_seq,
                           a=a, bottom_size=bottom_size,
                           hidden_size=H, top_size=top_size, tile_t=8))

    def ref_step(carry, xs):
        c_t, h_t, z_t = carry
        hb_t, ht_t, zb_t = xs
        hn, cn, zn = hm_lstm_cell_ref(params, c_t, hb_t, h_t, ht_t, z_t, zb_t,
                                      a=a, hidden_size=H)
        return (cn, hn, zn), (hn, cn, zn)

    _, (h_seq_ref, c_seq_ref, z_seq_ref) = jax.lax.scan(
        ref_step, (c, h, z), (hb_seq, ht_seq, zb_seq))

    assert jnp.allclose(h_seq, h_seq_ref, atol=1e-4, rtol=1e-4)
    assert jnp.allclose(c_seq, c_seq_ref, atol=1e-4, rtol=1e-4)
    assert jnp.allclose(z_seq, z_seq_ref)

    print("KERNEL_OK")
</pallas_src>

<mosaic_0001>
module attributes {stable_mosaic.version = 11 : i64} {
  func.func @kernel(%arg0: memref<72x128xf32, #tpu.memory_space<vmem>>, %arg1: memref<1x72xf32, #tpu.memory_space<vmem>>, %arg2: memref<1x128xf32, #tpu.memory_space<vmem>>, %arg3: memref<1x1xf32, #tpu.memory_space<vmem>>, %arg4: memref<8x16xf32, #tpu.memory_space<vmem>>, %arg5: memref<8x24xf32, #tpu.memory_space<vmem>>, %arg6: memref<8x32xf32, #tpu.memory_space<vmem>>, %arg7: memref<8x32xf32, #tpu.memory_space<vmem>>, %arg8: memref<8x1xf32, #tpu.memory_space<vmem>>, %arg9: memref<8x1xf32, #tpu.memory_space<vmem>>, %arg10: memref<8x65xf32, #tpu.memory_space<vmem>>, %arg11: memref<8x72xf32, #tpu.memory_space<vmem>>) attributes {dimension_semantics = [], scalar_prefetch = 0 : i64, scratch_operands = 1 : i64, tpu.core_type = #tpu.core_type<tc>} {
    %c0 = arith.constant 0 : index
    %c0_0 = arith.constant 0 : index
    %0 = vector.load %arg8[%c0, %c0_0] : memref<8x1xf32, #tpu.memory_space<vmem>>, vector<8x1xf32>
    %c0_1 = arith.constant 0 : index
    %c0_2 = arith.constant 0 : index
    %1 = vector.load %arg9[%c0_1, %c0_2] : memref<8x1xf32, #tpu.memory_space<vmem>>, vector<8x1xf32>
    %c0_3 = arith.constant 0 : index
    %c0_4 = arith.constant 0 : index
    %2 = vector.load %arg6[%c0_3, %c0_4] : memref<8x32xf32, #tpu.memory_space<vmem>>, vector<8x32xf32>
    %c0_5 = arith.constant 0 : index
    %c0_6 = arith.constant 0 : index
    %3 = vector.load %arg7[%c0_5, %c0_6] : memref<8x32xf32, #tpu.memory_space<vmem>>, vector<8x32xf32>
    %c0_7 = arith.constant 0 : index
    %c0_8 = arith.constant 0 : index
    %4 = vector.load %arg4[%c0_7, %c0_8] : memref<8x16xf32, #tpu.memory_space<vmem>>, vector<8x16xf32>
    %c0_9 = arith.constant 0 : index
    %c0_10 = arith.constant 0 : index
    %5 = vector.load %arg11[%c0_9, %c0_10] : memref<8x72xf32, #tpu.memory_space<vmem>>, vector<8x16xf32>
    tpu.vector_store %arg11[%c0_9, %c0_10], %4 {strides = array<i32>} : memref<8x72xf32, #tpu.memory_space<vmem>>, vector<8x16xf32>,
    %c0_11 = arith.constant 0 : index
    %c0_12 = arith.constant 0 : index
    %6 = vector.load %arg5[%c0_11, %c0_12] : memref<8x24xf32, #tpu.memory_space<vmem>>, vector<8x24xf32>
    %7 = vector.broadcast %0 : vector<8x1xf32> to vector<8x24xf32>
    %8 = arith.mulf %6, %7 : vector<8x24xf32>
    %c0_13 = arith.constant 0 : index
    %c16 = arith.constant 16 : index
    %9 = vector.load %arg11[%c0_13, %c16] : memref<8x72xf32, #tpu.memory_space<vmem>>, vector<8x24xf32>
    tpu.vector_store %arg11[%c0_13, %c16], %8 {strides = array<i32>} : memref<8x72xf32, #tpu.memory_space<vmem>>, vector<8x24xf32>,
    %10 = vector.broadcast %1 : vector<8x1xf32> to vector<8x32xf32>
    %11 = arith.mulf %2, %10 : vector<8x32xf32>
    %c0_14 = arith.constant 0 : index
    %c40 = arith.constant 40 : index
    %12 = vector.load %arg11[%c0_14, %c40] : memref<8x72xf32, #tpu.memory_space<vmem>>, vector<8x32xf32>
    tpu.vector_store %arg11[%c0_14, %c40], %11 {strides = array<i32>} : memref<8x72xf32, #tpu.memory_space<vmem>>, vector<8x32xf32>,
    %c0_15 = arith.constant 0 : index
    %c0_16 = arith.constant 0 : index
    %13 = vector.load %arg11[%c0_15, %c0_16] : memref<8x72xf32, #tpu.memory_space<vmem>>, vector<8x72xf32>
    %c0_17 = arith.constant 0 : index
    %c0_18 = arith.constant 0 : index
    %14 = vector.load %arg0[%c0_17, %c0_18] : memref<72x128xf32, #tpu.memory_space<vmem>>, vector<72x128xf32>
    %cst = arith.constant dense<0.000000e+00> : vector<8x128xf32>
    %15 = tpu.matmul %13, %14, %cst {dimension_numbers = #tpu.dot_dimension_numbers<[1], [0], [0], [1], [0, 0, 1, 1], [], []>} : vector<8x72xf32>, vector<72x128xf32>, vector<8x128xf32> -> vector<8x128xf32>
    %c0_19 = arith.constant 0 : index
    %c0_20 = arith.constant 0 : index
    %16 = vector.load %arg2[%c0_19, %c0_20] : memref<1x128xf32, #tpu.memory_space<vmem>>, vector<1x128xf32>
    %17 = vector.broadcast %16 : vector<1x128xf32> to vector<8x128xf32>
    %18 = arith.addf %15, %17 : vector<8x128xf32>
    %c0_21 = arith.constant 0 : index
    %c0_22 = arith.constant 0 : index
    %19 = vector.load %arg1[%c0_21, %c0_22] : memref<1x72xf32, #tpu.memory_space<vmem>>, vector<1x72xf32>
    %20 = vector.broadcast %19 : vector<1x72xf32> to vector<8x72xf32>
    %21 = arith.mulf %13, %20 : vector<8x72xf32>
    %cst_23 = arith.constant dense<0.000000e+00> : vector<8xf32>
    %22 = vector.multi_reduction <add>, %21, %cst_23 [1] : vector<8x72xf32> to vector<8xf32>
    %23 = vector.shape_cast %22 : vector<8xf32> to vector<8x1xf32>
    %c0_24 = arith.constant 0 : index
    %c0_25 = arith.constant 0 : index
    %24 = vector.load %arg3[%c0_24, %c0_25] : memref<1x1xf32, #tpu.memory_space<vmem>>, vector<1x1xf32>
    %25 = vector.broadcast %24 : vector<1x1xf32> to vector<8x1xf32>
    %26 = arith.addf %23, %25 : vector<8x1xf32>
    %27 = vector.extract_strided_slice %18 {offsets = [0, 0], sizes = [8, 96], strides = [1, 1]} : vector<8x128xf32> to vector<8x96xf32>
    %28 = arith.negf %27 : vector<8x96xf32>
    %29 = math.exp %28 : vector<8x96xf32>
    %cst_26 = arith.constant 1.000000e+00 : f32
    %30 = vector.broadcast %cst_26 : f32 to vector<8x96xf32>
    %31 = arith.addf %30, %29 : vector<8x96xf32>
    %32 = arith.divf %30, %31 : vector<8x96xf32>
    %33 = vector.extract_strided_slice %32 {offsets = [0, 0], sizes = [8, 32], strides = [1, 1]} : vector<8x96xf32> to vector<8x32xf32>
    %34 = vector.extract_strided_slice %32 {offsets = [0, 32], sizes = [8, 32], strides = [1, 1]} : vector<8x96xf32> to vector<8x32xf32>
    %35 = vector.extract_strided_slice %32 {offsets = [0, 64], sizes = [8, 32], strides = [1, 1]} : vector<8x96xf32> to vector<8x32xf32>
    %36 = vector.extract_strided_slice %18 {offsets = [0, 96], sizes = [8, 32], strides = [1, 1]} : vector<8x128xf32> to vector<8x32xf32>
    %37 = math.tanh %36 : vector<8x32xf32>
    %38 = vector.shape_cast %0 : vector<8x1xf32> to vector<8x1xf32>
    %39 = vector.broadcast %38 : vector<8x1xf32> to vector<8x32xf32>
    %40 = vector.shape_cast %1 : vector<8x1xf32> to vector<8x1xf32>
    %41 = vector.broadcast %40 : vector<8x1xf32> to vector<8x32xf32>
    %cst_27 = arith.constant 1.000000e+00 : f32
    %42 = vector.broadcast %cst_27 : f32 to vector<8x32xf32>
    %43 = arith.subf %42, %39 : vector<8x32xf32>
    %cst_28 = arith.constant 1.000000e+00 : f32
    %44 = vector.broadcast %cst_28 : f32 to vector<8x32xf32>
    %45 = arith.subf %44, %41 : vector<8x32xf32>
    %46 = arith.mulf %34, %37 : vector<8x32xf32>
    %47 = arith.mulf %39, %46 : vector<8x32xf32>
    %48 = arith.mulf %45, %3 : vector<8x32xf32>
    %49 = arith.mulf %33, %3 : vector<8x32xf32>
    %50 = arith.addf %49, %46 : vector<8x32xf32>
    %51 = arith.mulf %41, %50 : vector<8x32xf32>
    %52 = arith.addf %48, %51 : vector<8x32xf32>
    %53 = arith.mulf %43, %52 : vector<8x32xf32>
    %54 = arith.addf %47, %53 : vector<8x32xf32>
    %55 = math.tanh %54 : vector<8x32xf32>
    %56 = arith.mulf %35, %55 : vector<8x32xf32>
    %57 = arith.mulf %39, %56 : vector<8x32xf32>
    %58 = arith.mulf %45, %2 : vector<8x32xf32>
    %59 = arith.mulf %41, %56 : vector<8x32xf32>
    %60 = arith.addf %58, %59 : vector<8x32xf32>
    %61 = arith.mulf %43, %60 : vector<8x32xf32>
    %62 = arith.addf %57, %61 : vector<8x32xf32>
    %cst_29 = arith.constant 0.000000e+00 : f32
    %63 = vector.broadcast %cst_29 : f32 to vector<8x1xf32>
    %64 = arith.cmpf ogt, %26, %63 : vector<8x1xf32>
    %65 = arith.extui %64 : vector<8x1xi1> to vector<8x1xi32>
    %66 = arith.sitofp %65 : vector<8x1xi32> to vector<8x1xf32>
    %c0_30 = arith.constant 0 : index
    %c0_31 = arith.constant 0 : index
    %67 = vector.load %arg10[%c0_30, %c0_31] : memref<8x65xf32, #tpu.memory_space<vmem>>, vector<8x32xf32>
    tpu.vector_store %arg10[%c0_30, %c0_31], %62 {strides = array<i32>} : memref<8x65xf32, #tpu.memory_space<vmem>>, vector<8x32xf32>,
    %c0_32 = arith.constant 0 : index
    %c32 = arith.constant 32 : index
    %68 = vector.load %arg10[%c0_32, %c32] : memref<8x65xf32, #tpu.memory_space<vmem>>, vector<8x32xf32>
    tpu.vector_store %arg10[%c0_32, %c32], %54 {strides = array<i32>} : memref<8x65xf32, #tpu.memory_space<vmem>>, vector<8x32xf32>,
    %c0_33 = arith.constant 0 : index
    %c64 = arith.constant 64 : index
    %69 = vector.load %arg10[%c0_33, %c64] : memref<8x65xf32, #tpu.memory_space<vmem>>, vector<8x1xf32>
    tpu.vector_store %arg10[%c0_33, %c64], %66 {strides = array<i32>} : memref<8x65xf32, #tpu.memory_space<vmem>>, vector<8x1xf32>,
    return
  }
}

</mosaic_0001>

<bundles_post_ra>
// kernel: tpu_custom_call.1
= control target key start
LH: loop header
LB: loop body
LE: loop exit
PB: predicated region body
PF: predicated region fallthrough
CT: control target
= control target key end

     0   :  { %s576_s0 = inlined_call_operand.hbm [shape: f32[72,128], index: 0, kind: input, shape index: {}]   ;;  %s577_s1 = inlined_call_operand.vmem [shape: f32[1,72], index: 1, kind: input, shape index: {}]   ;;  %s578_s2 = inlined_call_operand.hbm [shape: f32[1,128], index: 2, kind: input, shape index: {}]   ;;  %s579_s3 = inlined_call_operand.<no memory space> [shape: f32[1,1], index: 3, kind: input, shape index: {}]   ;;  %s580_s4 = inlined_call_operand.vmem [shape: f32[8,16], index: 4, kind: input, shape index: {}]   ;;  %s581_s5 = inlined_call_operand.vmem [shape: f32[8,24], index: 5, kind: input, shape index: {}]   ;;  %s582_s6 = inlined_call_operand.vmem [shape: f32[8,32], index: 6, kind: input, shape index: {}]   ;;  %s583_s7 = inlined_call_operand.vmem [shape: f32[8,32], index: 7, kind: input, shape index: {}]   ;;  %s584_s8 = inlined_call_operand.vmem [shape: f32[8,1], index: 8, kind: input, shape index: {}]   ;;  %s585_s9 = inlined_call_operand.vmem [shape: f32[8,1], index: 9, kind: input, shape index: {}]   ;;  %s586_s10 = inlined_call_operand.hbm [shape: f32[8,65], index: 10, kind: output, shape index: {}]  }
   0x1   :  { %v15_v0 = vstv %s579_s3 }
   0x2   :  { %16 = vst [vmem:[#allocation3] sm:$0x1] %v15_v0 }
   0x3   :  { %17 = vsyncpa [#allocation5], 0 }
   0x4   :  { %18 = vsyncpa [#allocation8], 0 }
   0x5   :  { %19 = vsyncpa [#allocation6], 0  ;;  %s433_s15 = smov [#allocation4]   ;;  %s361_s19 = scalar_lea.hbm %s576_s0, 1152 }
   0x6   :  { %s25_s16 = sshll.u32 %s433_s15, 4  ;;  %p362_p0 = scmp.ne.s32.totalorder %s576_s0, %s361_s19  ;;  %s26_s16 = int_to_ptr.vmem [resolvable:$true] %s25_s16 }
   0x7   :  { %p365_p1 = scmp.lt.u32.totalorder %s361_s19, %s576_s0 }
   0x9   :  { %p367_p2 = pnand %p365_p1, %p362_p0 }
   0xb   :  { %370 = shalt.err (!%p367_p2)
}
   0xc   :  { %s371_s3 = scalar_lea.vmem %s26_s16, 1152  ;;  %p376_p4 = scmp.lt.s32.totalorder %s26_s16, %s26_s16 }
   0xd   :  { %p372_p3 = scmp.ne.s32.totalorder %s26_s16, %s371_s3  ;;  %p377_p5 = scmp.lt.s32.totalorder %s371_s3, %s371_s3 }
   0xf   :  { %p378_p6 = por %p377_p5, %p376_p4 }
  0x11   :  { %p379_p7 = pnand %p378_p6, %p372_p3 }
  0x13   :  { %382 = shalt.err (!%p379_p7)
}
  0x14   :  { %s434_s24 = smov 128   ;;  %s435_s25 = smov 8  }
  0x15   :  { %31 = dma.hbm_to_vmem [thread:$0]  %s576_s0, 1152, %s26_s16, [#allocation5], %s434_s24, %s434_s24, %s435_s25  }
  0x16   :  { %s436_s28 = smov [#allocation7]   ;;  %s383_s12 = scalar_lea.hbm %s578_s2, 16 }
  0x17   :  { %s40_s29 = sshll.u32 %s436_s28, 4  ;;  %p384_p8 = scmp.ne.s32.totalorder %s578_s2, %s383_s12  ;;  %s41_s29 = int_to_ptr.vmem [resolvable:$true] %s40_s29 }
  0x18   :  { %p387_p9 = scmp.lt.u32.totalorder %s383_s12, %s578_s2 }
  0x1a   :  { %p389_p10 = pnand %p387_p9, %p384_p8 }
  0x1c   :  { %392 = shalt.err (!%p389_p10)
}
  0x1d   :  { %s393_s18 = scalar_lea.vmem %s41_s29, 16  ;;  %s397_s0 = scalar_lea.vmem %s41_s29, 32 }
  0x1e   :  { %p394_p11 = scmp.ne.s32.totalorder %s41_s29, %s393_s18  ;;  %p398_p12 = scmp.lt.s32.totalorder %s41_s29, %s41_s29 }
  0x1f   :  { %p399_p13 = scmp.lt.s32.totalorder %s397_s0, %s393_s18 }
  0x21   :  { %p400_p0 = por %p399_p13, %p398_p12 }
  0x23   :  { %p401_p1 = pnand %p400_p0, %p394_p11 }
  0x25   :  { %404 = shalt.err (!%p401_p1)
}
  0x26   :  { %43 = dma.hbm_to_vmem [thread:$0]  %s578_s2, 16, %s41_s29, [#allocation8]  }
  0x27   :  { %427 = dma.done.wait [#allocation5], 1152  }
  0x28   :  { %428 = vsyncadd [#allocation5], 4294966144 }
  0x29   :  { %429 = dma.done.wait [#allocation8], 16  }
  0x2a   :  { %430 = vsyncadd [#allocation8], 4294967280  ;;  %v437_v1 = vmov 0   ;;  %v64_v2 = vld [vmem:[%s584_s8] sm:$0xff]  ;;  %v97_v4 = vld [vmem:[#allocation4] sm:$0xff]  ;;  %vm69_vm0 = vcmask 130048  }
  0x2b   :  { %352 = vset.pattern.permute.xlu0 %v437_v1  ;;  %v65_v3 = vld [vmem:[%s585_s9] sm:$0xff]  ;;  %v98_v5 = vld [vmem:[#allocation4 + $0x8] sm:$0xff]  ;;  %v438_v7 = vmov 0.0|0.0   ;;  %v101_v12 = vld [vmem:[#allocation4 + $0x20] sm:$0xff]  ;;  %vm439_vm1 = vmmov 0   ;;  %v440_v18 = vmov 0.0  }
  0x2c   :  { %74 = vperm.xlu0 %352, %v64_v2   ;;  %v99_v6 = vld [vmem:[#allocation4 + $0x10] sm:$0xff]  ;;  %326 = vmatprep.subr.bf16.mxu0 %v438_v7  ;;  %v327_v8 = vpack.c.bf16 %v98_v5, %v97_v4  ;;  %v100_v9 = vld [vmem:[#allocation4 + $0x18] sm:$0xff]  ;;  %v102_v13 = vld [vmem:[#allocation4 + $0x28] sm:$0xff]  ;;  %s441_s25 = smov 16   ;;  %s442_s26 = smov 40   ;;  %vm82_vm2 = vcmask 326784  }
  0x2d   :  { %v68_v10 = vld [vmem:[%s580_s4] sm:$0xff]  ;;  %v330_v11 = vpack.c.bf16 %v100_v9, %v99_v6  ;;  %v333_v14 = vpack.c.bf16 %v102_v13, %v101_v12  ;;  %323 = vmatprep.mubr.msk.f32.mxu0 %vm439_vm1, %v440_v18  ;;  %v105_v20 = vld [vmem:[#allocation4 + $0x40] sm:$0xff]  ;;  %vm94_vm3 = vcmask 589120   ;;  %vm113_vm4 = vcmask 588800   ;;  %v289_v34 = vld [vmem:[#allocation7] ss:$0 sm:$0xff] }
  0x2e   :  { %70 = vst.msk [vmem:[#allocation2] sm:$0xff] %vm69_vm0, %v68_v10  ;;  %328 = vmatpush3.bf16.msra.mxu0 %v327_v8  ;;  %v103_v15 = vld [vmem:[#allocation4 + $0x30] sm:$0xff]  ;;  %v104_v16 = vld [vmem:[#allocation4 + $0x38] sm:$0xff]  ;;  %s445_s30 = smov 32   ;;  %vm263_vm6 = vcmask 261120   ;;  %vm265_vm7 = vcmask 523520  }
  0x2f   :  { %329 = vmatprep.subr.bf16.mxu0 %v438_v7  ;;  %v336_v17 = vpack.c.bf16 %v104_v16, %v103_v15  ;;  %v71_v19 = vld [vmem:[%s581_s5] sm:$0xff]  ;;  %v292_v0 = vld [vmem:[#allocation3] ss:$0 sm:$0xff]  ;;  %vm271_vm8 = vcmask 531968  }
  0x30   :  { %86 = vperm.xlu0 %352, %v65_v3   ;;  %v66_v23 = vld [vmem:[%s582_s6] sm:$0xff]  ;;  %s443_s6 = smov 64  }
  0x31   :  { %v291_v30 = vld [vmem:[%s577_s1] ss:$0 sm:$0xff]  ;;  %s444_s1 = smov 96  }
  0x32   :  { %331 = vmatpush3.bf16.msra.mxu0 %v330_v11  ;;  %v67_v45 = vld [vmem:[%s583_s7] sm:$0xff]  ;;  %s446_s7 = smov [#allocation9]  }
  0x33   :  { %332 = vmatprep.subr.bf16.mxu0 %v438_v7  ;;  %s279_s11 = sshll.u32 %s446_s7, 4  ;;  %s280_s11 = int_to_ptr.vmem [resolvable:$true] %s279_s11 }
  0x34   :  { %s405_s12 = scalar_lea.vmem %s280_s11, 128  ;;  %p410_p3 = scmp.lt.s32.totalorder %s280_s11, %s280_s11 }
  0x35   :  { %p406_p2 = scmp.ne.s32.totalorder %s280_s11, %s405_s12  ;;  %p411_p4 = scmp.lt.s32.totalorder %s405_s12, %s405_s12 }
  0x36   :  { %334 = vmatpush3.bf16.msra.mxu0 %v333_v14 }
  0x37   :  { %335 = vmatprep.subr.bf16.mxu0 %v438_v7  ;;  %p412_p5 = por %p411_p4, %p410_p3 }
  0x39   :  { %p413_p6 = pnand %p412_p5, %p406_p2 }
  0x3a   :  { %337 = vmatpush3.bf16.msra.mxu0 %v336_v17 }
  0x3b   :  { %321 = vmatprep.subr.mxu0 %v440_v18 }
  0x3e   :  { %322 = vmatpush3.msra.mxu0 %v105_v20 }
  0xab   :  { %v543_v21 = vpop.permute.xlu0 %74 }
  0xac   :  { %v77_v22 = vmul.f32 %v543_v21, %v71_v19  ;;  %v213_v51 = vsub.f32 1.0, %v543_v21 }
  0xae   :  { %79 = vrot.lane.b32.xlu1 %v77_v22, %s441_s25 }
  0xaf   :  { %v87_v24 = vpop.permute.xlu0 %86 }
  0xb0   :  { %v214_v25 = vsub.f32 1.0, %v87_v24  ;;  %v89_v26 = vmul.f32 %v87_v24, %v66_v23 }
  0xb2   :  { %91 = vrot.lane.b32.xlu1 %v89_v26, %s442_s26  ;;  %v243_v27 = vmul.f32 %v214_v25, %v66_v23  ;;  %v221_v49 = vmul.f32 %v214_v25, %v67_v45 }
 0x120   :  { %v80_v28 = vpop.permute.xlu1 %79 }
 0x121   :  { %83 = vst.msk [vmem:[#allocation2] sm:$0xff] %vm82_vm2, %v80_v28 }
 0x124   :  { %v92_v29 = vpop.permute.xlu1 %91 }
 0x125   :  { %95 = vst.msk [vmem:[#allocation2] sm:$0xff] %vm94_vm3, %v92_v29 }
 0x12c   :  { %v96_v31 = vld [vmem:[#allocation2] sm:$0xff] }
 0x12d   :  { %324 = vmatmul.mubr.msk.f32.vlgmr.msra.gmra.mrb[0].mxu0 %vm113_vm4, %v96_v31  ;;  %v194_v32 = vmul.f32 %v291_v30, %v96_v31 }
 0x12f   :  { %v195_v33 = vsel %vm113_vm4, %v194_v32, 0.0 }
 0x200   :  { %v183_v35 = vpop.f32.mrb[0].mxu0 }
 0x201   :  { %v184_v36 = vadd.f32 %v289_v34, %v183_v35  ;;  %v325_v37 = vpop.f32.mrb[1].mxu0 }
 0x203   :  { %353 = vtanh.f32 %v184_v36  ;;  %v293_v39 = vmul.f32 -1.442695, %v184_v36 }
 0x205   :  { %355 = vpow2.f32 %v293_v39 }
 0x20d   :  { %v354_v38 = vpop.eup %353 }
 0x20e   :  { %216 = vrot.lane.b32.xlu0 %v354_v38, %s443_s6 }
 0x20f   :  { %v356_v40 = vpop.eup %355 }
 0x210   :  { %v209_v41 = vadd.f32 1.0, %v356_v40 }
 0x212   :  { %357 = vrcp.f32 %v209_v41 }
 0x21c   :  { %v358_v42 = vpop.eup %357 }
 0x21d   :  { %v222_v46 = vmul.f32 %v358_v42, %v67_v45 }
 0x280   :  { %v217_v43 = vpop.permute.xlu0 %216 }
 0x281   :  { %v219_v44 = vmul.f32 %v358_v42, %v217_v43 }
 0x283   :  { %224 = vrot.lane.b32.xlu1 %v219_v44, %s444_s1  ;;  %v220_v54 = vmul.f32 %v219_v44, %v543_v21 }
 0x2f5   :  { %v225_v47 = vpop.permute.xlu1 %224 }
 0x2f6   :  { %v227_v48 = vadd.f32 %v225_v47, %v222_v46 }
 0x2f8   :  { %v228_v50 = vmul.f32 %v227_v48, %v87_v24 }
 0x2fa   :  { %v229_v52 = vadd.f32 %v228_v50, %v221_v49 }
 0x2fc   :  { %v230_v53 = vmul.f32 %v229_v52, %v213_v51 }
 0x2fe   :  { %232 = vrot.lane.b32.xlu0 %v230_v53, %s445_s30 }
 0x370   :  { %v233_v55 = vpop.permute.xlu0 %232 }
 0x371   :  { %v235_v56 = vadd.f32 %v233_v55, %v220_v54 }
 0x373   :  { %359 = vtanh.f32 %v235_v56 }
 0x37d   :  { %v360_v57 = vpop.eup %359 }
 0x37e   :  { %238 = vrot.lane.b32.xlu1 %v360_v57, %s445_s30 }
 0x3a2   :  { %196 = vadd.xlane.f32.xlu1 %v195_v33 }
 0x3f0   :  { %v239_v58 = vpop.permute.xlu1 %238 }
 0x3f1   :  { %v241_v59 = vmul.f32 %v358_v42, %v239_v58 }
 0x3f3   :  { %v244_v60 = vmul.f32 %v241_v59, %v87_v24  ;;  %v242_v3 = vmul.f32 %v241_v59, %v543_v21 }
 0x3f5   :  { %246 = vrot.lane.b32.xlu0 %v244_v60, %s443_s6 }
 0x42f   :  { %v197_v1 = vpop.xlane.xlu1 %196 }
 0x430   :  { %v205_v2 = vadd.f32 %v292_v0, %v197_v1 }
 0x432   :  { %vm256_vm5 = vcmp.gt.f32.partialorder %v205_v2, 0.0 }
 0x433   :  { %v294_v6 = vsel %vm256_vm5, 1.0, %v440_v18 }
 0x467   :  { %v247_v61 = vpop.permute.xlu0 %246 }
 0x468   :  { %v249_v62 = vadd.f32 %v247_v61, %v243_v27 }
 0x46a   :  { %v250_v63 = vmul.f32 %v249_v62, %v213_v51 }
 0x46c   :  { %252 = vrot.lane.b32.xlu0 %v250_v63, %s443_s6 }
 0x4de   :  { %v253_v4 = vpop.permute.xlu0 %252 }
 0x4df   :  { %v255_v5 = vadd.f32 %v253_v4, %v242_v3 }
 0x4e1   :  { %260 = vrot.lane.b32.xlu0 %v255_v5, %s443_s6 }
 0x4e5   :  { %268 = vrot.lane.b32.xlu0 %v294_v6, %s443_s6 }
 0x553   :  { %v261_v7 = vpop.permute.xlu0 %260 }
 0x554   :  { %264 = vst.msk [vmem:[#allocation9] sm:$0xff] %vm263_vm6, %v261_v7 }
 0x555   :  { %266 = vst.msk [vmem:[#allocation9] sm:$0xff] %vm265_vm7, %v235_v56 }
 0x557   :  { %v269_v8 = vpop.permute.xlu0 %268 }
 0x558   :  { %272 = vst.msk [vmem:[#allocation9] sm:$0xff] %vm271_vm8, %v269_v8 }
 0x559   :  { %416 = shalt.err (!%p413_p6)
}
 0x55a   :  { %s417_s15 = scalar_lea.hbm %s586_s10, 128 }
 0x55b   :  { %p418_p7 = scmp.ne.s32.totalorder %s586_s10, %s417_s15  ;;  %p421_p8 = scmp.lt.u32.totalorder %s417_s15, %s586_s10 }
 0x55d   :  { %p423_p9 = pnand %p421_p8, %p418_p7 }
 0x55f   :  { %426 = shalt.err (!%p423_p9)
}
 0x560   :  { %282 = dma.vmem_to_hbm [thread:$0]  %s280_s11, 128, %s586_s10, [#allocation6]  }
 0x561   :  { %431 = dma.done.wait [#allocation6], 128  }
 0x562   :  { %432 = vsyncadd [#allocation6], 4294967168 }
 0x563   :  { %286 = vsyncpa [#allocation5], 1 }
 0x564   :  { %287 = vsyncpa [#allocation8], 1 }
 0x565   :  { %288 = vsyncpa [#allocation6], 1 }

</bundles_post_ra>
